<compile_context>
chip_gen: v5e
topology: v5e:2x2
jax: 0.10.0
libtpu: 0.0.40
codegen_flags: <defaults>
</compile_context>

<pallas_src>
import functools

import jax
import jax.numpy as jnp
from jax import lax
from jax.experimental import pallas as pl
from jax.experimental.pallas import tpu as pltpu

LRELU_SLOPE = 0.1
_HW_TILE = 1024                  # lane tile for flattened spatial dim (multiple of 128)
_VMEM_LIMIT = 32 * 1024 * 1024   # explicit scoped-VMEM budget, safe on v5e/v6e/v7x


def _round_up(x, m):
    return ((x + m - 1) // m) * m


# ----------------------------- Pallas kernels -----------------------------

def _stft_mag_kernel(x_ref, basis_ref, out_ref, fr_ref, *,
                     n_frames, n_fft, hop, n_freq_pad):
    """Per batch element: frame in-kernel, real-DFT via one MXU matmul, |.|.

    x_ref:     (1, L)                padded signal (resident in VMEM)
    basis_ref: (2*n_freq_pad, n_fft) stacked [cos; -sin] bases (window folded in)
    out_ref:   (n_freq_pad, n_frames_pad)  lane dim = time frames (128-multiple)
    fr_ref:    (n_frames_pad, n_fft) VMEM scratch for framing
    """
    # Zero the scratch only when time padding exists, so padded DFT columns are 0
    # (they are sliced off in the wrapper anyway; this just keeps them finite).
    if fr_ref.shape[0] != n_frames:
        fr_ref[...] = jnp.zeros_like(fr_ref)

    # In-kernel framing: contiguous lane slices of the resident padded signal.
    # TODO(synk): at real resolutions (thousands of frames) switch to a frame-tiled
    #             grid axis + pl.loop with pl.ds instead of a static unroll.
    for t in range(n_frames):
        fr_ref[t:t + 1, :] = x_ref[:, t * hop: t * hop + n_fft]
    frames = fr_ref[...]                                   # (n_frames_pad, n_fft)

    # (2F, n_fft) . (n_frames_pad, n_fft)^T -> (2F, n_frames_pad): ONE matmul for
    # real and imaginary parts together.
    dn = (((1,), (1,)), ((), ()))
    y = lax.dot_general(basis_ref[...], frames, dn, preferred_element_type=jnp.float32)
    re = y[:n_freq_pad, :]
    im = y[n_freq_pad:, :]
    # No epsilon: matches torch.norm(torch.view_as_real(stft), p=2, dim=-1) exactly.
    out_ref[...] = jnp.sqrt(re * re + im * im)


def _conv_gemm_kernel(p_ref, w_ref, b_ref, o_ref, *, lrelu, slope):
    """Transposed, lane-dense conv GEMM + bias + optional LeakyReLU.

    p_ref: (K, T)    bf16 transposed im2col patches (lane = flattened spatial)
    w_ref: (Cout, K) bf16 weights
    b_ref: (Cout, 1) f32 bias
    o_ref: (Cout, T) f32 output tile  (NCHW layout for free, unmasked lane stores)
    """
    y = jnp.dot(w_ref[...], p_ref[...], preferred_element_type=jnp.float32)
    y = y + b_ref[...]
    if lrelu:
        y = jnp.where(y >= 0.0, y, y * slope)
    o_ref[...] = y


# ------------------------------ wrappers -----------------------------------

def spectrogram(x, resolution):
    """x: (B, 1, T) float32 -> magnitude spectrogram (B, n_freq, n_frames).

    torch semantics: reflect pad by (n_fft - hop)//2, stft(center=False, rectangular
    window of length win_length zero-padded centered to n_fft, onesided),
    |.|_2 over (real, imag).  The kernel emits (freq, time) directly, so the first
    conv needs no glue transpose.
    """
    n_fft, hop, win = resolution
    pad = (n_fft - hop) // 2
    xp = jnp.pad(x, ((0, 0), (0, 0), (pad, pad)), mode="reflect")[:, 0, :]   # (B, L)
    B, L = xp.shape
    n_frames = 1 + (L - n_fft) // hop
    n_freq = n_fft // 2 + 1
    n_freq_pad = _round_up(n_freq, 8)            # sublane-friendly output rows
    n_frames_pad = _round_up(n_frames, 128)      # lane-dense (unmasked) output stores

    # Rectangular window of length win_length, zero-padded centered to n_fft
    # (torch.stft default when window is None); folded into the DFT basis.
    wl = (n_fft - win) // 2
    window = jnp.zeros((n_fft,), jnp.float32).at[wl:wl + win].set(1.0)

    # Real-DFT bases, frequency-major.  Reduce (k*n) mod n_fft in INTEGER arithmetic
    # before scaling so large n_fft keeps full f32 precision in cos/sin.
    n = jnp.arange(n_fft, dtype=jnp.int32)[None, :]
    k = jnp.arange(n_freq_pad, dtype=jnp.int32)[:, None]
    ang = (2.0 * jnp.pi / n_fft) * ((k * n) % n_fft).astype(jnp.float32)
    # torch exp(-i*2*pi*n*k/N) convention -> imaginary basis is -sin (|.| unaffected).
    basis = jnp.concatenate([jnp.cos(ang), -jnp.sin(ang)], axis=0) * window[None, :]

    xp3 = xp[:, None, :]                                    # (B, 1, L)

    kern = functools.partial(_stft_mag_kernel, n_frames=n_frames, n_fft=n_fft,
                             hop=hop, n_freq_pad=n_freq_pad)
    flops = 2 * B * (2 * n_freq_pad) * n_fft * n_frames_pad
    bytes_accessed = xp.size * 4 + basis.size * 4 + B * n_freq_pad * n_frames_pad * 4

    mag = pl.pallas_call(
        kern,
        out_shape=jax.ShapeDtypeStruct((B, n_freq_pad, n_frames_pad), jnp.float32),
        grid=(B,),
        in_specs=[
            pl.BlockSpec((pl.Squeezed(), 1, L), lambda b: (b, 0, 0)),
            pl.BlockSpec((2 * n_freq_pad, n_fft), lambda b: (0, 0)),
        ],
        out_specs=pl.BlockSpec((pl.Squeezed(), n_freq_pad, n_frames_pad),
                               lambda b: (b, 0, 0)),
        scratch_shapes=[pltpu.VMEM((n_frames_pad, n_fft), jnp.float32)],
        compiler_params=pltpu.CompilerParams(
            dimension_semantics=("parallel",),
            vmem_limit_bytes=_VMEM_LIMIT,
        ),
        cost_estimate=pl.CostEstimate(
            flops=flops,
            transcendentals=B * n_freq_pad * n_frames_pad,
            bytes_accessed=bytes_accessed),
    )(xp3, basis)

    # drop padded freq rows / time columns (cheap aligned slices)
    return mag[:, :n_freq, :n_frames]


def conv2d_lrelu_pallas(x, w, b, *, stride=(1, 1), padding=(0, 0), lrelu=True):
    """NCHW Conv2d (cross-correlation, zero pad) + optional LeakyReLU.

    The GEMM runs transposed — (Cout, K) x (K, HW) — so the flattened spatial dim is
    the lane dim (lane-dense stores) and the output is NCHW without any transpose.
    bf16 operands, f32 accumulation.
    """
    N, Cin, H, W = x.shape
    KH, KW, _, Cout = w.shape          # HWIO synthetic weights
    sh, sw = stride
    ph, pw = padding

    H_out = (H + 2 * ph - KH) // sh + 1
    W_out = (W + 2 * pw - KW) // sw + 1
    HW = H_out * W_out
    K = KH * KW * Cin

    # --- glue im2col, already transposed to (N, K, HW), cast to bf16 (halves bytes).
    # TODO(synk): at real MRD resolutions replace this materialized im2col with an
    #             in-kernel implicit GEMM (accumulate over (kh,kw) taps from a padded
    #             VMEM tile) to avoid the KH*KW x HBM duplication.
    xp = jnp.pad(x, ((0, 0), (0, 0), (ph, ph), (pw, pw)))
    taps = []
    for kh in range(KH):
        for kw in range(KW):
            sl = lax.slice(
                xp, (0, 0, kh, kw),
                (N, Cin, kh + (H_out - 1) * sh + 1, kw + (W_out - 1) * sw + 1),
                (1, 1, sh, sw))                              # (N, Cin, H_out, W_out)
            taps.append(sl.reshape(N, Cin, HW))
    pT = jnp.concatenate(taps, axis=1)                       # (N, K, HW), (kh,kw,ci)-major

    Kp = _round_up(K, 8)                                     # clean sublane packing
    # Lane tiling: always pad the flattened spatial dim to a multiple of 128 so every
    # output store is an unmasked, lane-dense vst; padded columns are sliced off below.
    tile = min(_HW_TILE, _round_up(HW, 128))
    HWp = _round_up(HW, tile)
    n_hw = HWp // tile

    if Kp != K or HWp != HW:
        pT = jnp.pad(pT, ((0, 0), (0, Kp - K), (0, HWp - HW)))
    pT = pT.astype(jnp.bfloat16)

    # weights HWIO -> (Cout, kh, kw, ci) -> (Cout, K): matches im2col ordering above.
    wT = jnp.transpose(w, (3, 0, 1, 2)).reshape(Cout, K)
    if Kp != K:
        wT = jnp.pad(wT, ((0, 0), (0, Kp - K)))
    wT = wT.astype(jnp.bfloat16)
    b2 = b.reshape(Cout, 1).astype(jnp.float32)

    kern = functools.partial(_conv_gemm_kernel, lrelu=lrelu, slope=LRELU_SLOPE)
    flops = 2 * N * Cout * Kp * HWp
    bytes_accessed = pT.size * 2 + wT.size * 2 + b2.size * 4 + N * Cout * HWp * 4

    y = pl.pallas_call(
        kern,
        out_shape=jax.ShapeDtypeStruct((N, Cout, HWp), jnp.float32),
        grid=(N, n_hw),
        in_specs=[
            pl.BlockSpec((pl.Squeezed(), Kp, tile), lambda n, t: (n, 0, t)),
            pl.BlockSpec((Cout, Kp), lambda n, t: (0, 0)),     # weights stay resident
            pl.BlockSpec((Cout, 1), lambda n, t: (0, 0)),
        ],
        out_specs=pl.BlockSpec((pl.Squeezed(), Cout, tile), lambda n, t: (n, 0, t)),
        compiler_params=pltpu.CompilerParams(
            dimension_semantics=("parallel", "parallel"),
            vmem_limit_bytes=_VMEM_LIMIT,
        ),
        cost_estimate=pl.CostEstimate(flops=flops, transcendentals=0,
                                      bytes_accessed=bytes_accessed),
    )(pT, wT, b2)

    if HWp != HW:
        y = y[:, :, :HW]
    return y.reshape(N, Cout, H_out, W_out)      # free row-major reshape -> NCHW


# --------------------------- model definition -------------------------------

# (stride_w, pad_h, pad_w) for the 5 convs + conv_post, as in DiscriminatorR.__init__
LAYER_CFG = [(1, 1, 4), (2, 1, 4), (2, 1, 4), (2, 1, 4), (1, 1, 1), (1, 1, 1)]


def init_params(key, channels):
    """Deterministic synthetic weights (HWIO) matching the module's conv shapes."""
    C = channels
    shapes = [
        (3, 9, 1, C),   # conv 0
        (3, 9, C, C),   # conv 1
        (3, 9, C, C),   # conv 2
        (3, 9, C, C),   # conv 3
        (3, 3, C, C),   # conv 4
        (3, 3, C, 1),   # conv_post
    ]
    params = []
    for i, s in enumerate(shapes):
        kw_, kb_ = jax.random.split(jax.random.fold_in(key, i))
        w = 0.05 * jax.random.normal(kw_, s, jnp.float32)
        b = 0.01 * jax.random.normal(kb_, (s[-1],), jnp.float32)
        params.append((w, b))
    return params


def discriminator_r_forward(x, params, resolution):
    """x: (B, 1, T) -> (flattened logits (B, H*W), fmap list in NCHW)."""
    mag = spectrogram(x, resolution)          # (B, n_freq, n_frames)
    h = mag[:, None, :, :]                    # NCHW with C=1 (stays NCHW throughout)

    fmap = []
    for i in range(5):
        w, b = params[i]
        sw, ph, pw = LAYER_CFG[i]
        h = conv2d_lrelu_pallas(h, w, b, stride=(1, sw), padding=(ph, pw), lrelu=True)
        fmap.append(h)
    w, b = params[5]
    sw, ph, pw = LAYER_CFG[5]
    h = conv2d_lrelu_pallas(h, w, b, stride=(1, sw), padding=(ph, pw), lrelu=False)
    fmap.append(h)

    # torch.flatten(x, 1, -1) on NCHW (B,1,H,W): row-major over (C=1, H, W)
    out = h.reshape(h.shape[0], -1)
    return out, fmap


# ----------------------------------- main ------------------------------------

if __name__ == "__main__":
    key = jax.random.PRNGKey(0)
    kx, kp = jax.random.split(key)

    resolution = (32, 8, 32)          # (n_fft, hop_length, win_length), small
    d_mult = 0.25                     # cfg.model.mrd.discriminator_channel_mult_factor
    channels = int(32 * d_mult)       # -> 8 channels

    # input audio: (batch, 1, time) like the torch module expects
    x = jax.random.normal(kx, (2, 1, 64), jnp.float32)
    params = init_params(kp, channels)

    out, fmap = discriminator_r_forward(x, params, resolution)
    jax.block_until_ready(out)
    jax.block_until_ready(fmap)

    assert out.shape == (2, 17)                      # (B, n_freq * final_frames)
    assert fmap[0].shape == (2, channels, 17, 8)     # NCHW feature maps
    assert fmap[-1].shape == (2, 1, 17, 1)
    print("KERNEL_OK")
</pallas_src>

<mosaic_0001>
module attributes {stable_mosaic.version = 11 : i64} {
  func.func @_stft_mag_kernel(%arg0: i32, %arg1: memref<1x1x88xf32, #tpu.memory_space<vmem>>, %arg2: memref<48x32xf32, #tpu.memory_space<vmem>>, %arg3: memref<1x24x128xf32, #tpu.memory_space<vmem>>, %arg4: memref<128x32xf32, #tpu.memory_space<vmem>>) attributes {dimension_semantics = [#tpu.dimension_semantics<parallel>], iteration_bounds = array<i64: 2>, scalar_prefetch = 0 : i64, scratch_operands = 1 : i64, tpu.core_type = #tpu.core_type<tc>, window_params = [{transform_indices = @transform_0, window_bounds = array<i64: 1, 1, 88>}, {pipeline_mode = #tpu.pipeline_mode<synchronous>, transform_indices = @transform_1, window_bounds = array<i64: 48, 32>}, {transform_indices = @transform_2, window_bounds = array<i64: 1, 24, 128>}]} {
    %cst = arith.constant 0.000000e+00 : f32
    %0 = vector.broadcast %cst : f32 to vector<128x32xf32>
    %c0 = arith.constant 0 : index
    %c0_0 = arith.constant 0 : index
    %1 = vector.load %arg4[%c0, %c0_0] : memref<128x32xf32, #tpu.memory_space<vmem>>, vector<128x32xf32>
    tpu.vector_store %arg4[%c0, %c0_0], %0 {strides = array<i32>} : memref<128x32xf32, #tpu.memory_space<vmem>>, vector<128x32xf32>,
    %c0_1 = arith.constant 0 : index
    %c0_2 = arith.constant 0 : index
    %c0_3 = arith.constant 0 : index
    %2 = vector.load %arg1[%c0_1, %c0_2, %c0_3] : memref<1x1x88xf32, #tpu.memory_space<vmem>>, vector<1x1x32xf32>
    %3 = vector.shape_cast %2 : vector<1x1x32xf32> to vector<1x32xf32>
    %c0_4 = arith.constant 0 : index
    %c0_5 = arith.constant 0 : index
    %4 = vector.load %arg4[%c0_4, %c0_5] : memref<128x32xf32, #tpu.memory_space<vmem>>, vector<1x32xf32>
    tpu.vector_store %arg4[%c0_4, %c0_5], %3 {strides = array<i32>} : memref<128x32xf32, #tpu.memory_space<vmem>>, vector<1x32xf32>,
    %c0_6 = arith.constant 0 : index
    %c0_7 = arith.constant 0 : index
    %c8 = arith.constant 8 : index
    %5 = vector.load %arg1[%c0_6, %c0_7, %c8] : memref<1x1x88xf32, #tpu.memory_space<vmem>>, vector<1x1x32xf32>
    %6 = vector.shape_cast %5 : vector<1x1x32xf32> to vector<1x32xf32>
    %c1 = arith.constant 1 : index
    %c0_8 = arith.constant 0 : index
    %7 = vector.load %arg4[%c1, %c0_8] : memref<128x32xf32, #tpu.memory_space<vmem>>, vector<1x32xf32>
    tpu.vector_store %arg4[%c1, %c0_8], %6 {strides = array<i32>} : memref<128x32xf32, #tpu.memory_space<vmem>>, vector<1x32xf32>,
    %c0_9 = arith.constant 0 : index
    %c0_10 = arith.constant 0 : index
    %c16 = arith.constant 16 : index
    %8 = vector.load %arg1[%c0_9, %c0_10, %c16] : memref<1x1x88xf32, #tpu.memory_space<vmem>>, vector<1x1x32xf32>
    %9 = vector.shape_cast %8 : vector<1x1x32xf32> to vector<1x32xf32>
    %c2 = arith.constant 2 : index
    %c0_11 = arith.constant 0 : index
    %10 = vector.load %arg4[%c2, %c0_11] : memref<128x32xf32, #tpu.memory_space<vmem>>, vector<1x32xf32>
    tpu.vector_store %arg4[%c2, %c0_11], %9 {strides = array<i32>} : memref<128x32xf32, #tpu.memory_space<vmem>>, vector<1x32xf32>,
    %c0_12 = arith.constant 0 : index
    %c0_13 = arith.constant 0 : index
    %c24 = arith.constant 24 : index
    %11 = vector.load %arg1[%c0_12, %c0_13, %c24] : memref<1x1x88xf32, #tpu.memory_space<vmem>>, vector<1x1x32xf32>
    %12 = vector.shape_cast %11 : vector<1x1x32xf32> to vector<1x32xf32>
    %c3 = arith.constant 3 : index
    %c0_14 = arith.constant 0 : index
    %13 = vector.load %arg4[%c3, %c0_14] : memref<128x32xf32, #tpu.memory_space<vmem>>, vector<1x32xf32>
    tpu.vector_store %arg4[%c3, %c0_14], %12 {strides = array<i32>} : memref<128x32xf32, #tpu.memory_space<vmem>>, vector<1x32xf32>,
    %c0_15 = arith.constant 0 : index
    %c0_16 = arith.constant 0 : index
    %c32 = arith.constant 32 : index
    %14 = vector.load %arg1[%c0_15, %c0_16, %c32] : memref<1x1x88xf32, #tpu.memory_space<vmem>>, vector<1x1x32xf32>
    %15 = vector.shape_cast %14 : vector<1x1x32xf32> to vector<1x32xf32>
    %c4 = arith.constant 4 : index
    %c0_17 = arith.constant 0 : index
    %16 = vector.load %arg4[%c4, %c0_17] : memref<128x32xf32, #tpu.memory_space<vmem>>, vector<1x32xf32>
    tpu.vector_store %arg4[%c4, %c0_17], %15 {strides = array<i32>} : memref<128x32xf32, #tpu.memory_space<vmem>>, vector<1x32xf32>,
    %c0_18 = arith.constant 0 : index
    %c0_19 = arith.constant 0 : index
    %c40 = arith.constant 40 : index
    %17 = vector.load %arg1[%c0_18, %c0_19, %c40] : memref<1x1x88xf32, #tpu.memory_space<vmem>>, vector<1x1x32xf32>
    %18 = vector.shape_cast %17 : vector<1x1x32xf32> to vector<1x32xf32>
    %c5 = arith.constant 5 : index
    %c0_20 = arith.constant 0 : index
    %19 = vector.load %arg4[%c5, %c0_20] : memref<128x32xf32, #tpu.memory_space<vmem>>, vector<1x32xf32>
    tpu.vector_store %arg4[%c5, %c0_20], %18 {strides = array<i32>} : memref<128x32xf32, #tpu.memory_space<vmem>>, vector<1x32xf32>,
    %c0_21 = arith.constant 0 : index
    %c0_22 = arith.constant 0 : index
    %c48 = arith.constant 48 : index
    %20 = vector.load %arg1[%c0_21, %c0_22, %c48] : memref<1x1x88xf32, #tpu.memory_space<vmem>>, vector<1x1x32xf32>
    %21 = vector.shape_cast %20 : vector<1x1x32xf32> to vector<1x32xf32>
    %c6 = arith.constant 6 : index
    %c0_23 = arith.constant 0 : index
    %22 = vector.load %arg4[%c6, %c0_23] : memref<128x32xf32, #tpu.memory_space<vmem>>, vector<1x32xf32>
    tpu.vector_store %arg4[%c6, %c0_23], %21 {strides = array<i32>} : memref<128x32xf32, #tpu.memory_space<vmem>>, vector<1x32xf32>,
    %c0_24 = arith.constant 0 : index
    %c0_25 = arith.constant 0 : index
    %c56 = arith.constant 56 : index
    %23 = vector.load %arg1[%c0_24, %c0_25, %c56] : memref<1x1x88xf32, #tpu.memory_space<vmem>>, vector<1x1x32xf32>
    %24 = vector.shape_cast %23 : vector<1x1x32xf32> to vector<1x32xf32>
    %c7 = arith.constant 7 : index
    %c0_26 = arith.constant 0 : index
    %25 = vector.load %arg4[%c7, %c0_26] : memref<128x32xf32, #tpu.memory_space<vmem>>, vector<1x32xf32>
    tpu.vector_store %arg4[%c7, %c0_26], %24 {strides = array<i32>} : memref<128x32xf32, #tpu.memory_space<vmem>>, vector<1x32xf32>,
    %c0_27 = arith.constant 0 : index
    %c0_28 = arith.constant 0 : index
    %26 = vector.load %arg4[%c0_27, %c0_28] : memref<128x32xf32, #tpu.memory_space<vmem>>, vector<128x32xf32>
    %c0_29 = arith.constant 0 : index
    %c0_30 = arith.constant 0 : index
    %27 = vector.load %arg2[%c0_29, %c0_30] : memref<48x32xf32, #tpu.memory_space<vmem>>, vector<48x32xf32>
    %cst_31 = arith.constant dense<0.000000e+00> : vector<48x128xf32>
    %28 = tpu.matmul %27, %26, %cst_31 {dimension_numbers = #tpu.dot_dimension_numbers<[1], [1], [0], [0], [0, 0, 1, 0], [], []>} : vector<48x32xf32>, vector<128x32xf32>, vector<48x128xf32> -> vector<48x128xf32>
    %29 = vector.extract_strided_slice %28 {offsets = [0, 0], sizes = [24, 128], strides = [1, 1]} : vector<48x128xf32> to vector<24x128xf32>
    %30 = vector.extract_strided_slice %28 {offsets = [24, 0], sizes = [24, 128], strides = [1, 1]} : vector<48x128xf32> to vector<24x128xf32>
    %31 = arith.mulf %29, %29 : vector<24x128xf32>
    %32 = arith.mulf %30, %30 : vector<24x128xf32>
    %33 = arith.addf %31, %32 : vector<24x128xf32>
    %34 = math.sqrt %33 : vector<24x128xf32>
    %c0_32 = arith.constant 0 : index
    %c0_33 = arith.constant 0 : index
    %c0_34 = arith.constant 0 : index
    %35 = vector.load %arg3[%c0_32, %c0_33, %c0_34] : memref<1x24x128xf32, #tpu.memory_space<vmem>>, vector<1x24x128xf32>
    %36 = vector.shape_cast %35 : vector<1x24x128xf32> to vector<24x128xf32>
    %37 = vector.shape_cast %34 : vector<24x128xf32> to vector<1x24x128xf32>
    tpu.vector_store %arg3[%c0_32, %c0_33, %c0_34], %37 {strides = array<i32>} : memref<1x24x128xf32, #tpu.memory_space<vmem>>, vector<1x24x128xf32>,
    return
  }
  func.func @transform_0(%arg0: i32) -> (i32, i32, i32) {
    %c0_i32 = arith.constant 0 : i32
    %c0_i32_0 = arith.constant 0 : i32
    %c0_i32_1 = arith.constant 0 : i32
    return %arg0, %c0_i32, %c0_i32_0 : i32, i32, i32
  }
  func.func @transform_1(%arg0: i32) -> (i32, i32) {
    %c0_i32 = arith.constant 0 : i32
    %c0_i32_0 = arith.constant 0 : i32
    %c0_i32_1 = arith.constant 0 : i32
    return %c0_i32, %c0_i32_0 : i32, i32
  }
  func.func @transform_2(%arg0: i32) -> (i32, i32, i32) {
    %c0_i32 = arith.constant 0 : i32
    %c0_i32_0 = arith.constant 0 : i32
    %c0_i32_1 = arith.constant 0 : i32
    return %arg0, %c0_i32, %c0_i32_0 : i32, i32, i32
  }
}

</mosaic_0001>

<bundles_post_ra>
// kernel: tpu_custom_call.1
= control target key start
LH: loop header
LB: loop body
LE: loop exit
PB: predicated region body
PF: predicated region fallthrough
CT: control target
= control target key end

     0   :  { %7 = vsyncpa [#allocation4], 0  ;;  %s892_s0 = inlined_call_operand.vmem [shape: f32[2,1,88], index: 0, kind: input, shape index: {}]   ;;  %s893_s1 = inlined_call_operand.vmem [shape: f32[48,32], index: 1, kind: input, shape index: {}]   ;;  %s894_s2 = inlined_call_operand.hbm [shape: f32[2,24,128], index: 2, kind: output, shape index: {}]  }
   0x1   :  { %9 = vsyncpa [#allocation4 + $0x1], 0  ;;  %s681_s9 = smov 0   ;;  %s683_s10 = smov 0  }
   0x2   :  { %s685_s11 = smov 0   ;;  %s687_s12 = smov 0  }
   0x3 LB: > { %s702_s13 = sadd.s32 4294967295, %s654_s12   ;;  %s451_s14 = sadd.s32 4294967294, %s654_s12   ;;  %s654_s12 = sphi %s687_s12, %s900_s12   ;;  %s650_s11 = sphi %s685_s11, %s899_s11   ;;  %s646_s10 = sphi %s683_s10, %s898_s10   ;;  %s642_s9 = sphi %s681_s9, %s897_s9  }
   0x4   : > { %s706_s15 = sadd.s32 1, %s654_s12   ;;  %s69_s16 = sadd.s32 1, %s650_s11 }
   0x5   : > { %s66_s17 = ssub.s32 %s654_s12, %s706_s15  ;;  %p79_p0 = scmp.ne.s32.totalorder %s650_s11, %s646_s10 }
   0x6   : > { %p67_p1 = scmp.eq.s32.totalorder %s66_s17, 0  ;;  %p80_p2 = scmp.eq.s32.totalorder %s702_s13, 1 }
   0x7   : > { %p85_p3 = scmp.ne.s32.totalorder %s646_s10, %s642_s9  ;;  %p86_p4 = scmp.eq.s32.totalorder %s451_s14, 1 }
   0x8   : > { %s717_s18 = scalar_select %p67_p1, %s650_s11, %s69_s16  }
   0x9   : > { %p719_p5 = por %p80_p2, %p79_p0  ;;  %p723_p6 = por %p86_p4, %p85_p3 }
   0xa   : > { %p454_p7 = scmp.ge.s32.totalorder %s654_s12, 1  ;;  %p113_p8 = scmp.lt.s32.totalorder %s654_s12, 3 }
   0xc   : > { %p114_p9 = pnand %p454_p7, %p113_p8 }
   0xd   : > { %p133_p10 = scmp.lt.s32.totalorder (!%p114_p9), %s702_s13, 1  ;;  %s657_s25 = smov (!%p114_p9), 120  }
   0xe   : > { %117 = sbr.rel (%p114_p9) target bundleno = 336 (0x150), region = 28  ;;  %s658_s26 = smov (!%p114_p9), 104  }
   0xf   : > { %s659_s27 = smov (!%p114_p9), 88   ;;  %s660_s28 = smov (!%p114_p9), 112  }
  0x10   : > { %s661_s29 = smov (!%p114_p9), 96   ;;  %s662_s30 = smov (!%p114_p9), 80  }
  0x11   : > { %s663_s3 = smov (!%p114_p9), 72   ;;  %s612_s16 = scalar_lea.hbm (!%p114_p9), %s894_s2, 48 }
  0x13   : > { %vm136_vm0 = vcmask 261120   ;;  %v656_v0 = vmov 0.0   ;;  %s134_s21 = scalar_select %p133_p10, %s702_s13, 1  ;;  %vm154_vm1 = vcmask 253952   ;;  %v222_v32 = vld [vmem:[%s893_s1 + $0x8] sm:$0xff]  ;;  %v221_v33 = vld [vmem:[%s893_s1] sm:$0xff] }
  0x14   : > { %152 = vst.msk [vmem:[#allocation2 + $0x78] sm:$0xff] %vm136_vm0, %v656_v0  ;;  %v223_v34 = vld [vmem:[%s893_s1 + $0x10] sm:$0xff]  ;;  %v225_v35 = vld [vmem:[%s893_s1 + $0x20] sm:$0xff]  ;;  %v224_v36 = vld [vmem:[%s893_s1 + $0x18] sm:$0xff] }
  0x15   : > { %137 = vst.msk [vmem:[#allocation2] sm:$0xff] %vm136_vm0, %v656_v0  ;;  %s737_s24 = scalar_lea.vmem %s892_s0, %s134_s21  ;;  %v226_v37 = vld [vmem:[%s893_s1 + $0x28] sm:$0xff] }
  0x16   : > { %138 = vst.msk [vmem:[#allocation2 + $0x8] sm:$0xff] %vm136_vm0, %v656_v0  ;;  %v579_v1 = vld [vmem:[%s737_s24] ss:$0 sm:$0xff] }
  0x17   : > { %139 = vst.msk [vmem:[#allocation2 + $0x10] sm:$0xff] %vm136_vm0, %v656_v0  ;;  %v580_v2 = vld [vmem:[%s737_s24] ss:$0 sm:$0xff]  ;;  %159 = vrot.lane.b32.xlu0 %v579_v1, %s657_s25  ;;  %s130_s25 = sand.u32 1, %s646_s10  }
  0x18   : > { %173 = vrot.lane.b32.xlu1 %v580_v2, %s658_s26  ;;  %v584_v3 = vld [vmem:[%s737_s24] ss:$0 sm:$0xff]  ;;  %140 = vst.msk [vmem:[#allocation2 + $0x18] sm:$0xff] %vm136_vm0, %v656_v0  ;;  %s528_s26 = smul.u32 24, %s130_s25  ;;  %s377_s5 = scalar_lea.sflag [#allocation4], %s130_s25 }
  0x19   : > { %v581_v5 = vld [vmem:[%s737_s24] ss:$0 sm:$0xff]  ;;  %187 = vrot.lane.b32.xlu2 %v584_v3, %s659_s27  ;;  %141 = vst.msk [vmem:[#allocation2 + $0x20] sm:$0xff] %vm136_vm0, %v656_v0  ;;  %s529_s27 = smul.u32 24, %s702_s13 }
  0x1a   : > { %v582_v6 = vld [vmem:[%s737_s24] ss:$0 sm:$0xff]  ;;  %142 = vst.msk [vmem:[#allocation2 + $0x28] sm:$0xff] %vm136_vm0, %v656_v0 }
  0x1b   : > { %v220_v4 = vld [vmem:[#allocation2 + $0x78] sm:$0xff]  ;;  %143 = vst.msk [vmem:[#allocation2 + $0x30] sm:$0xff] %vm136_vm0, %v656_v0  ;;  %v585_v7 = vld [vmem:[%s737_s24] ss:$0 sm:$0xff] }
  0x1c   : > { %455 = vmatpush.xpose.msk.msra.mxu0 %vm136_vm0, %v220_v4  ;;  %480 = vmatpush.xpose.msk.msra.mxu1 %vm136_vm0, %v220_v4  ;;  %144 = vst.msk [vmem:[#allocation2 + $0x38] sm:$0xff] %vm136_vm0, %v656_v0  ;;  %v583_v8 = vld [vmem:[%s737_s24] ss:$0 sm:$0xff] }
  0x1d   : > { %481 = vmatpush.xpose.msk.msra.mxu2 %vm136_vm0, %v220_v4  ;;  %482 = vmatpush.xpose.msk.msra.mxu3 %vm136_vm0, %v220_v4  ;;  %145 = vst.msk [vmem:[#allocation2 + $0x40] sm:$0xff] %vm136_vm0, %v656_v0  ;;  %v153_v9 = vld [vmem:[%s737_s24] sm:$0x1]  ;;  %v206_v24 = vld [vmem:[#allocation2 + $0x8] sm:$0xff] }
  0x1e   : > { %146 = vst.msk [vmem:[#allocation2 + $0x48] sm:$0xff] %vm136_vm0, %v656_v0  ;;  %v207_v23 = vld [vmem:[#allocation2 + $0x10] sm:$0xff] }
  0x1f   : > { %166 = vrot.lane.b32.xlu0 %v581_v5, %s660_s28  ;;  %147 = vst.msk [vmem:[#allocation2 + $0x50] sm:$0xff] %vm136_vm0, %v656_v0  ;;  %v208_v21 = vld [vmem:[#allocation2 + $0x18] sm:$0xff]  ;;  %s132_s28 = scalar_lea.vmem [#allocation3], %s528_s26 }
  0x20   : > { %180 = vrot.lane.b32.xlu1 %v582_v6, %s661_s29  ;;  %148 = vst.msk [vmem:[#allocation2 + $0x58] sm:$0xff] %vm136_vm0, %v656_v0  ;;  %v209_v20 = vld [vmem:[#allocation2 + $0x20] sm:$0xff]  ;;  %s389_s4 = sshll.u32 %s132_s28, 4  ;;  %s390_s4 = int_to_ptr.vmem [resolvable:$true] %s389_s4 }
  0x21   : > { %194 = vrot.lane.b32.xlu2 %v585_v7, %s662_s30  ;;  %149 = vst.msk [vmem:[#allocation2 + $0x60] sm:$0xff] %vm136_vm0, %v656_v0  ;;  %v210_v19 = vld [vmem:[#allocation2 + $0x28] sm:$0xff] }
  0x22   : > { %150 = vst.msk [vmem:[#allocation2 + $0x68] sm:$0xff] %vm136_vm0, %v656_v0  ;;  %v211_v18 = vld [vmem:[#allocation2 + $0x30] sm:$0xff] }
  0x23   : > { %151 = vst.msk [vmem:[#allocation2 + $0x70] sm:$0xff] %vm136_vm0, %v656_v0  ;;  %v212_v17 = vld [vmem:[#allocation2 + $0x38] sm:$0xff] }
  0x24   : > { %155 = vst.msk [vmem:[#allocation2] sm:$0x1] %vm154_vm1, %v153_v9  ;;  %v213_v16 = vld [vmem:[#allocation2 + $0x40] sm:$0xff] }
  0x25   : > { %v214_v15 = vld [vmem:[#allocation2 + $0x48] sm:$0xff] }
  0x26   : > { %v215_v14 = vld [vmem:[#allocation2 + $0x50] sm:$0xff] }
  0x27   : > { %201 = vrot.lane.b32.xlu0 %v583_v8, %s663_s3  ;;  %v216_v13 = vld [vmem:[#allocation2 + $0x58] sm:$0xff]  ;;  %s388_s3 = scalar_lea.hbm %s894_s2, %s529_s27 }
  0x28   : > { %v217_v12 = vld [vmem:[#allocation2 + $0x60] sm:$0xff]  ;;  %s391_s13 = sshll.u32 %s388_s3, 4  ;;  %s392_s13 = int_to_ptr.hbm [resolvable:$true] %s391_s13 }
  0x29   : > { %v218_v11 = vld [vmem:[#allocation2 + $0x68] sm:$0xff]  ;;  %s606_s6 = sshra.s32 %s392_s13, 4  ;;  %s607_s6 = int_to_ptr.hbm [resolvable:$true] %s606_s6 }
  0x2a   : > { %v219_v10 = vld [vmem:[#allocation2 + $0x70] sm:$0xff]  ;;  %s608_s7 = scalar_lea.hbm %s607_s6, 24  ;;  %p613_p0 = scmp.lt.s32.totalorder %s607_s6, %s894_s2 }
  0x2b   : > { %456 = vmatpush.xpose.msk.msra.mxu0 %vm136_vm0, %v219_v10  ;;  %483 = vmatpush.xpose.msk.msra.mxu1 %vm136_vm0, %v219_v10  ;;  %p609_p11 = scmp.ne.s32.totalorder %s607_s6, %s608_s7  ;;  %p614_p1 = scmp.lt.s32.totalorder %s612_s16, %s608_s7 }
  0x2c   : > { %484 = vmatpush.xpose.msk.msra.mxu2 %vm136_vm0, %v219_v10  ;;  %485 = vmatpush.xpose.msk.msra.mxu3 %vm136_vm0, %v219_v10 }
  0x2d   : > { %p610_p12 = pnand %p609_p11, %p719_p5  ;;  %p615_p2 = por %p614_p1, %p613_p0 }
  0x2f   : > { %457 = vmatpush.xpose.msk.msra.mxu0 %vm136_vm0, %v218_v11  ;;  %486 = vmatpush.xpose.msk.msra.mxu1 %vm136_vm0, %v218_v11  ;;  %p611_p13 = pneg %p610_p12 }
  0x30   : > { %487 = vmatpush.xpose.msk.msra.mxu2 %vm136_vm0, %v218_v11  ;;  %488 = vmatpush.xpose.msk.msra.mxu3 %vm136_vm0, %v218_v11 }
  0x31   : > { %p616_p3 = pnand %p615_p2, %p611_p13 }
  0x33   : > { %458 = vmatpush.xpose.msk.msra.mxu0 %vm136_vm0, %v217_v12  ;;  %489 = vmatpush.xpose.msk.msra.mxu1 %vm136_vm0, %v217_v12 }
  0x34   : > { %490 = vmatpush.xpose.msk.msra.mxu2 %vm136_vm0, %v217_v12  ;;  %491 = vmatpush.xpose.msk.msra.mxu3 %vm136_vm0, %v217_v12 }
  0x37   : > { %459 = vmatpush.xpose.msk.msra.mxu0 %vm136_vm0, %v216_v13  ;;  %492 = vmatpush.xpose.msk.msra.mxu1 %vm136_vm0, %v216_v13 }
  0x38   : > { %493 = vmatpush.xpose.msk.msra.mxu2 %vm136_vm0, %v216_v13  ;;  %494 = vmatpush.xpose.msk.msra.mxu3 %vm136_vm0, %v216_v13 }
  0x3b   : > { %460 = vmatpush.xpose.msk.msra.mxu0 %vm136_vm0, %v215_v14  ;;  %495 = vmatpush.xpose.msk.msra.mxu1 %vm136_vm0, %v215_v14 }
  0x3c   : > { %496 = vmatpush.xpose.msk.msra.mxu2 %vm136_vm0, %v215_v14  ;;  %497 = vmatpush.xpose.msk.msra.mxu3 %vm136_vm0, %v215_v14 }
  0x3f   : > { %461 = vmatpush.xpose.msk.msra.mxu0 %vm136_vm0, %v214_v15  ;;  %498 = vmatpush.xpose.msk.msra.mxu1 %vm136_vm0, %v214_v15 }
  0x40   : > { %499 = vmatpush.xpose.msk.msra.mxu2 %vm136_vm0, %v214_v15  ;;  %500 = vmatpush.xpose.msk.msra.mxu3 %vm136_vm0, %v214_v15 }
  0x43   : > { %462 = vmatpush.xpose.msk.msra.mxu0 %vm136_vm0, %v213_v16  ;;  %501 = vmatpush.xpose.msk.msra.mxu1 %vm136_vm0, %v213_v16 }
  0x44   : > { %502 = vmatpush.xpose.msk.msra.mxu2 %vm136_vm0, %v213_v16  ;;  %503 = vmatpush.xpose.msk.msra.mxu3 %vm136_vm0, %v213_v16 }
  0x47   : > { %463 = vmatpush.xpose.msk.msra.mxu0 %vm136_vm0, %v212_v17  ;;  %504 = vmatpush.xpose.msk.msra.mxu1 %vm136_vm0, %v212_v17 }
  0x48   : > { %505 = vmatpush.xpose.msk.msra.mxu2 %vm136_vm0, %v212_v17  ;;  %506 = vmatpush.xpose.msk.msra.mxu3 %vm136_vm0, %v212_v17 }
  0x4b   : > { %464 = vmatpush.xpose.msk.msra.mxu0 %vm136_vm0, %v211_v18  ;;  %507 = vmatpush.xpose.msk.msra.mxu1 %vm136_vm0, %v211_v18 }
  0x4c   : > { %508 = vmatpush.xpose.msk.msra.mxu2 %vm136_vm0, %v211_v18  ;;  %509 = vmatpush.xpose.msk.msra.mxu3 %vm136_vm0, %v211_v18 }
  0x4f   : > { %465 = vmatpush.xpose.msk.msra.mxu0 %vm136_vm0, %v210_v19  ;;  %510 = vmatpush.xpose.msk.msra.mxu1 %vm136_vm0, %v210_v19 }
  0x50   : > { %511 = vmatpush.xpose.msk.msra.mxu2 %vm136_vm0, %v210_v19  ;;  %512 = vmatpush.xpose.msk.msra.mxu3 %vm136_vm0, %v210_v19 }
  0x53   : > { %466 = vmatpush.xpose.msk.msra.mxu0 %vm136_vm0, %v209_v20  ;;  %513 = vmatpush.xpose.msk.msra.mxu1 %vm136_vm0, %v209_v20 }
  0x54   : > { %514 = vmatpush.xpose.msk.msra.mxu2 %vm136_vm0, %v209_v20  ;;  %515 = vmatpush.xpose.msk.msra.mxu3 %vm136_vm0, %v209_v20 }
  0x57   : > { %467 = vmatpush.xpose.msk.msra.mxu0 %vm136_vm0, %v208_v21  ;;  %516 = vmatpush.xpose.msk.msra.mxu1 %vm136_vm0, %v208_v21 }
  0x58   : > { %517 = vmatpush.xpose.msk.msra.mxu2 %vm136_vm0, %v208_v21  ;;  %518 = vmatpush.xpose.msk.msra.mxu3 %vm136_vm0, %v208_v21 }
  0x5b   : > { %468 = vmatpush.xpose.msk.msra.mxu0 %vm136_vm0, %v207_v23  ;;  %519 = vmatpush.xpose.msk.msra.mxu1 %vm136_vm0, %v207_v23 }
  0x5c   : > { %520 = vmatpush.xpose.msk.msra.mxu2 %vm136_vm0, %v207_v23  ;;  %521 = vmatpush.xpose.msk.msra.mxu3 %vm136_vm0, %v207_v23 }
  0x5f   : > { %469 = vmatpush.xpose.msk.msra.mxu0 %vm136_vm0, %v206_v24  ;;  %522 = vmatpush.xpose.msk.msra.mxu1 %vm136_vm0, %v206_v24 }
  0x60   : > { %523 = vmatpush.xpose.msk.msra.mxu2 %vm136_vm0, %v206_v24  ;;  %524 = vmatpush.xpose.msk.msra.mxu3 %vm136_vm0, %v206_v24 }
  0x73   : > { %v188_v22 = vpop.permute.xlu2 %187 }
  0x74   : > { %190 = vst.msk [vmem:[#allocation2 + $0x5] sm:$0x1] %vm154_vm1, %v188_v22 }
  0x7b   : > { %v195_v25 = vpop.permute.xlu2 %194 }
  0x7c   : > { %197 = vst.msk [vmem:[#allocation2 + $0x6] sm:$0x1] %vm154_vm1, %v195_v25 }
  0x89   : > { %v160_v26 = vpop.permute.xlu0 %159 }
  0x8a   : > { %162 = vst.msk [vmem:[#allocation2 + $0x1] sm:$0x1] %vm154_vm1, %v160_v26  ;;  %v174_v27 = vpop.permute.xlu1 %173 }
  0x8b   : > { %176 = vst.msk [vmem:[#allocation2 + $0x3] sm:$0x1] %vm154_vm1, %v174_v27 }
  0x91   : > { %v167_v28 = vpop.permute.xlu0 %166 }
  0x92   : > { %169 = vst.msk [vmem:[#allocation2 + $0x2] sm:$0x1] %vm154_vm1, %v167_v28  ;;  %v181_v29 = vpop.permute.xlu1 %180 }
  0x93   : > { %183 = vst.msk [vmem:[#allocation2 + $0x4] sm:$0x1] %vm154_vm1, %v181_v29 }
  0x99   : > { %v202_v30 = vpop.permute.xlu0 %201 }
  0x9a   : > { %204 = vst.msk [vmem:[#allocation2 + $0x7] sm:$0x1] %vm154_vm1, %v202_v30 }
  0xa1   : > { %v205_v31 = vld [vmem:[#allocation2] sm:$0xff] }
  0xa2   : > { %470 = vmatpush.xpose.msk.msra.mxu0 %vm136_vm0, %v205_v31  ;;  %525 = vmatpush.xpose.msk.msra.mxu1 %vm136_vm0, %v205_v31 }
  0xa3   : > { %526 = vmatpush.xpose.msk.msra.mxu2 %vm136_vm0, %v205_v31  ;;  %527 = vmatpush.xpose.msk.msra.mxu3 %vm136_vm0, %v205_v31 }
  0xa5   : > { %472 = vmatmul.msk.f32.vlgmr.msra.gmra.mxu1 %vm136_vm0, %v222_v32  ;;  %471 = vmatmul.msk.f32.vlgmr.msra.gmra.mxu0 %vm136_vm0, %v221_v33 }
  0xa6   : > { %473 = vmatmul.msk.f32.vlgmr.msra.gmra.mxu2 %vm136_vm0, %v223_v34  ;;  %475 = vmatmul.msk.f32.vlgmr.msra.gmra.mxu3 %vm136_vm0, %v225_v35 }
  0xae   : > { %474 = vmatmul.msk.f32.gmra.mxu2 %vm136_vm0, %v224_v36  ;;  %476 = vmatmul.msk.f32.gmra.mxu3 %vm136_vm0, %v226_v37 }
 0x122   : > { %v313_v38 = vpop.f32.mrf.mxu1  ;;  %v310_v44 = vpop.f32.mrf.mxu0 }
 0x123   : > { %v329_v39 = vmul.f32 %v313_v38, %v313_v38  ;;  %v328_v45 = vmul.f32 %v310_v44, %v310_v44 }
 0x129   : > { %v316_v40 = vpop.f32.mrf.mxu2  ;;  %v322_v41 = vpop.f32.mrf.mxu3 }
 0x12a   : > { %v332_v42 = vmul.f32 %v322_v41, %v322_v41  ;;  %v330_v48 = vmul.f32 %v316_v40, %v316_v40 }
 0x12c   : > { %v335_v43 = vadd.f32 %v332_v42, %v329_v39 }
 0x12e   : > { %586 = vrsqrt.f32 %v335_v43  ;;  %vm356_vm2 = vcmp.eq.f32.partialorder %v335_v43, inf  ;;  %v359_v1 = vand.u32 2147483648, %v335_v43  ;;  %vm358_vm3 = vcmp.eq.f32.partialorder %v335_v43, 0.0 }
 0x131   : > { %v319_v46 = vpop.f32.mrf.mxu2  ;;  %v325_v47 = vpop.f32.mrf.mxu3 }
 0x132   : > { %v331_v49 = vmul.f32 %v319_v46, %v319_v46  ;;  %v333_v50 = vmul.f32 %v325_v47, %v325_v47 }
 0x134   : > { %v587_v51 = vpop.eup %586  ;;  %v334_v52 = vadd.f32 %v331_v49, %v328_v45  ;;  %v336_v53 = vadd.f32 %v333_v50, %v330_v48 }
 0x135   : > { %v350_v54 = vmul.f32 %v587_v51, %v335_v43 }
 0x136   : > { %588 = vrsqrt.f32 %v334_v52  ;;  %vm344_vm4 = vcmp.eq.f32.partialorder %v334_v52, inf  ;;  %v347_v12 = vand.u32 2147483648, %v334_v52  ;;  %vm346_vm5 = vcmp.eq.f32.partialorder %v334_v52, 0.0 }
 0x137   : > { %590 = vrsqrt.f32 %v336_v53  ;;  %v351_v55 = vmul.f32 %v587_v51, %v350_v54  ;;  %vm368_vm6 = vcmp.eq.f32.partialorder %v336_v53, inf  ;;  %v371_v15 = vand.u32 2147483648, %v336_v53 }
 0x138   : > { %vm370_vm7 = vcmp.eq.f32.partialorder %v336_v53, 0.0 }
 0x139   : > { %v352_v56 = vmul.f32 0.5, %v351_v55 }
 0x13b   : > { %v353_v57 = vsub.f32 1.5, %v352_v56 }
 0x13c   : > { %v589_v58 = vpop.eup %588 }
 0x13d   : > { %v591_v59 = vpop.eup %590  ;;  %v338_v60 = vmul.f32 %v589_v58, %v334_v52  ;;  %v354_v61 = vmul.f32 %v587_v51, %v353_v57 }
 0x13e   : > { %v362_v62 = vmul.f32 %v591_v59, %v336_v53 }
 0x13f   : > { %v339_v63 = vmul.f32 %v589_v58, %v338_v60  ;;  %v355_v0 = vmul.f32 %v354_v61, %v335_v43 }
 0x140   : > { %v363_v2 = vmul.f32 %v591_v59, %v362_v62 }
 0x141   : > { %v340_v3 = vmul.f32 0.5, %v339_v63  ;;  %v357_v4 = vsel %vm356_vm2, %v335_v43, %v355_v0 }
 0x142   : > { %v360_v5 = vsel %vm358_vm3, %v359_v1, %v357_v4  ;;  %v364_v6 = vmul.f32 0.5, %v363_v2 }
 0x143   : > { %v341_v7 = vsub.f32 1.5, %v340_v3  ;;  %374 = vst [vmem:[%s132_s28 + $0x8] sm:$0xff] %v360_v5 }
 0x144   : > { %v365_v8 = vsub.f32 1.5, %v364_v6 }
 0x145   : > { %v342_v9 = vmul.f32 %v589_v58, %v341_v7 }
 0x146   : > { %v366_v10 = vmul.f32 %v591_v59, %v365_v8 }
 0x147   : > { %v343_v11 = vmul.f32 %v342_v9, %v334_v52 }
 0x148   : > { %v367_v13 = vmul.f32 %v366_v10, %v336_v53 }
 0x149   : > { %v345_v14 = vsel %vm344_vm4, %v334_v52, %v343_v11 }
 0x14a   : > { %v348_v16 = vsel %vm346_vm5, %v347_v12, %v345_v14  ;;  %v369_v17 = vsel %vm368_vm6, %v336_v53, %v367_v13 }
 0x14b   : > { %v372_v18 = vsel %vm370_vm7, %v371_v15, %v369_v17  ;;  %373 = vst [vmem:[%s132_s28] sm:$0xff] %v348_v16 }
 0x14c   : > { %375 = vst [vmem:[%s132_s28 + $0x10] sm:$0xff] %v372_v18 }
 0x14d   : > { %619 = shalt.err (!%p616_p3)
}
 0x14e   : > { %s664_s22 = smov 128   ;;  %s665_s23 = smov 8  }
 0x14f   : > { %530 = dma.vmem_to_hbm [thread:$0]  (%p719_p5), %s390_s4, 384, %s392_s13, %s377_s5, %s664_s22, %s664_s22, %s665_s23  }
 0x150 PF: > { %p536_p4 = scmp.ge.s32.totalorder %s654_s12, 2  ;;  %s406_s24 = sand.u32 1, %s642_s9  }
 0x151   : > { %s407_s25 = scalar_lea.sflag [#allocation4], %s406_s24 }
 0x152   : > { %p533_p7 = pnand %p536_p4, %p723_p6 }
 0x154   : > { %p534_p8 = pneg %p533_p7 }
 0x156   : > { %637 = dma.done.wait (%p534_p8), %s407_s25, 384  }
 0x157   : > { %639 = vsyncadd (%p534_p8), %s407_s25, 4294966912  ;;  %p12_p9 = scmp.ge.s32.totalorder %s706_s15, 4   ;;  %s897_s9 = smov %s646_s10 }
 0x158   : > { %s898_s10 = smov %s650_s11  ;;  %s899_s11 = smov %s717_s18 }
 0x159   : > { %s900_s12 = smov %s706_s15  ;;  %14 = sbr.rel (!%p12_p9) target bundleno = 3 (0x3), region = 63 }
 0x15e   :  { %413 = vsyncpa [#allocation4], 1 }
 0x15f   :  { %415 = vsyncpa [#allocation4 + $0x1], 1 }

</bundles_post_ra>
